<compile_context>
chip_gen: v6e
topology: v6e:2x2x1
jax: 0.10.0
libtpu: 0.0.40
codegen_flags: <defaults>
</compile_context>

<pallas_src>
import functools

import jax
import jax.numpy as jnp
from jax.experimental import pallas as pl
from jax.experimental.pallas import tpu as pltpu


def _round_up(x, m):
    return (x + m - 1) // m * m


# --------------------------------------------------------------------------
# Fused tiled matmul + BN affine + (optional residual) + activation kernel
# --------------------------------------------------------------------------

def _fused_matmul_kernel(*refs, act, has_res):
    if has_res:
        a_ref, b_ref, s_ref, t_ref, r_ref, o_ref, acc_ref = refs
    else:
        a_ref, b_ref, s_ref, t_ref, o_ref, acc_ref = refs
        r_ref = None

    k = pl.program_id(2)

    @pl.when(k == 0)
    def _():
        acc_ref[...] = jnp.zeros_like(acc_ref)

    acc_ref[...] += jnp.dot(a_ref[...], b_ref[...],
                            preferred_element_type=jnp.float32)

    @pl.when(k == pl.num_programs(2) - 1)
    def _():
        y = acc_ref[...] * s_ref[...] + t_ref[...]
        if r_ref is not None:
            y = y + r_ref[...]
        if act == "relu":
            y = jnp.maximum(y, 0.0)
        elif act == "leaky":
            y = jnp.where(y > 0.0, y, 0.1 * y)
        o_ref[...] = y


def _mm_impl(a, b, scale, shift, res, act):
    """out[:M,:N] = act((a @ b) * scale + shift [+ res]); bf16 MXU, f32 epilogue."""
    M, K = a.shape
    N = b.shape[1]

    # Tile sizes: rows multiple of 8, cols multiple of 128 (lane-dense stores).
    tm = min(512, _round_up(M, 8))
    tn = min(256, _round_up(N, 128))
    tk = min(512, _round_up(K, 128))
    Mp, Np, Kp = _round_up(M, tm), _round_up(N, tn), _round_up(K, tk)

    a_p = jnp.pad(a.astype(jnp.bfloat16), ((0, Mp - M), (0, Kp - K)))
    b_p = jnp.pad(b.astype(jnp.bfloat16), ((0, Kp - K), (0, Np - N)))
    s_p = jnp.pad(scale.astype(jnp.float32), (0, Np - N)).reshape(1, Np)
    t_p = jnp.pad(shift.astype(jnp.float32), (0, Np - N)).reshape(1, Np)

    in_specs = [
        pl.BlockSpec((tm, tk), lambda i, j, k: (i, k)),
        pl.BlockSpec((tk, tn), lambda i, j, k: (k, j)),
        pl.BlockSpec((1, tn), lambda i, j, k: (0, j)),
        pl.BlockSpec((1, tn), lambda i, j, k: (0, j)),
    ]
    args = [a_p, b_p, s_p, t_p]
    has_res = res is not None
    if has_res:
        r_p = jnp.pad(res.astype(jnp.float32), ((0, Mp - M), (0, Np - N)))
        in_specs.append(pl.BlockSpec((tm, tn), lambda i, j, k: (i, j)))
        args.append(r_p)

    flops = 2 * Mp * Np * Kp
    bytes_acc = (Mp * Kp + Kp * Np) * 2 + Mp * Np * 4 * (2 if has_res else 1)

    out = pl.pallas_call(
        functools.partial(_fused_matmul_kernel, act=act, has_res=has_res),
        out_shape=jax.ShapeDtypeStruct((Mp, Np), jnp.float32),
        grid=(Mp // tm, Np // tn, Kp // tk),
        in_specs=in_specs,
        out_specs=pl.BlockSpec((tm, tn), lambda i, j, k: (i, j)),
        scratch_shapes=[pltpu.VMEM((tm, tn), jnp.float32)],
        compiler_params=pltpu.CompilerParams(
            dimension_semantics=("parallel", "parallel", "arbitrary"),
            vmem_limit_bytes=32 * 1024 * 1024,
        ),
        cost_estimate=pl.CostEstimate(
            flops=flops, transcendentals=0, bytes_accessed=bytes_acc),
    )(*args)
    return out[:M, :N]


@functools.partial(jax.jit, static_argnames=("act",))
def _mm_nores(a, b, scale, shift, act):
    return _mm_impl(a, b, scale, shift, None, act)


@functools.partial(jax.jit, static_argnames=("act",))
def _mm_res(a, b, scale, shift, res, act):
    return _mm_impl(a, b, scale, shift, res, act)


def matmul_affine_act(a, b, scale, shift, act="none", residual=None):
    if residual is None:
        return _mm_nores(a, b, scale, shift, act)
    return _mm_res(a, b, scale, shift, residual, act)


# --------------------------------------------------------------------------
# MaxPool 3x3/s2 : running max over 9 shifted views, tiled over rows
# --------------------------------------------------------------------------

def _max9_kernel(*refs):
    o_ref = refs[-1]
    y = refs[0][...]
    for r in refs[1:-1]:
        y = jnp.maximum(y, r[...])
    o_ref[...] = y


@jax.jit
def _max9(cols):  # list of 9 arrays, each (M, C)
    M, C = cols[0].shape
    tm = min(1024, _round_up(M, 8))
    Mp = _round_up(M, tm)
    cols_p = [jnp.pad(c, ((0, Mp - M), (0, 0))) for c in cols]
    out = pl.pallas_call(
        _max9_kernel,
        out_shape=jax.ShapeDtypeStruct((Mp, C), jnp.float32),
        grid=(Mp // tm,),
        in_specs=[pl.BlockSpec((tm, C), lambda i: (i, 0))] * 9,
        out_specs=pl.BlockSpec((tm, C), lambda i: (i, 0)),
        compiler_params=pltpu.CompilerParams(dimension_semantics=("parallel",)),
    )(*cols_p)
    return out[:M]


# --------------------------------------------------------------------------
# Global average pool (AdaptiveAvgPool2d((1,1))) : channel-tiled
# --------------------------------------------------------------------------

def _gap_kernel(x_ref, o_ref):
    o_ref[...] = jnp.mean(x_ref[...], axis=1)


@jax.jit
def global_avg_pool(x):  # (B, HW, C) -> (B, C)
    B, HW, C = x.shape
    cblk = 128 if C % 128 == 0 else C
    return pl.pallas_call(
        _gap_kernel,
        out_shape=jax.ShapeDtypeStruct((B, C), jnp.float32),
        grid=(C // cblk,),
        in_specs=[pl.BlockSpec((B, HW, cblk), lambda j: (0, 0, j))],
        out_specs=pl.BlockSpec((B, cblk), lambda j: (0, j)),
        compiler_params=pltpu.CompilerParams(dimension_semantics=("parallel",)),
    )(x)


# --------------------------------------------------------------------------
# ClassBlock: Linear -> BatchNorm1d -> Dropout(eval noop) -> Linear, one launch
# --------------------------------------------------------------------------

def _classblock_kernel(f_ref, w1_ref, s1_ref, t1_ref, w2_ref, b2_ref, o_ref):
    h = jnp.dot(f_ref[...], w1_ref[...], preferred_element_type=jnp.float32)
    h = h * s1_ref[...] + t1_ref[...]
    # Dropout(p=0.5) is an identity in eval mode.
    o_ref[...] = jnp.dot(h, w2_ref[...], preferred_element_type=jnp.float32) + b2_ref[...]


@jax.jit
def classblock_forward(f, w1, b1, bn_scale, bn_shift, w2, b2):
    B, F = f.shape
    H = w1.shape[1]
    Ncls = w2.shape[1]
    shift = b1 * bn_scale + bn_shift  # fold linear bias into BN shift
    return pl.pallas_call(
        _classblock_kernel,
        out_shape=jax.ShapeDtypeStruct((B, Ncls), jnp.float32),
        grid=(1,),
        in_specs=[
            pl.BlockSpec((B, F), lambda i: (0, 0)),
            pl.BlockSpec((F, H), lambda i: (0, 0)),
            pl.BlockSpec((1, H), lambda i: (0, 0)),
            pl.BlockSpec((1, H), lambda i: (0, 0)),
            pl.BlockSpec((H, Ncls), lambda i: (0, 0)),
            pl.BlockSpec((1, Ncls), lambda i: (0, 0)),
        ],
        out_specs=pl.BlockSpec((B, Ncls), lambda i: (0, 0)),
        compiler_params=pltpu.CompilerParams(dimension_semantics=("arbitrary",)),
    )(f, w1, bn_scale.reshape(1, H), shift.reshape(1, H), w2, b2.reshape(1, Ncls))


# --------------------------------------------------------------------------
# JAX glue: im2col (spatial convs only), conv/pool wrappers, ResNet structure
# --------------------------------------------------------------------------

def _im2col(x, kh, kw, stride, pad, pad_value=0.0):
    B, H, W, C = x.shape
    xp = jnp.pad(x, ((0, 0), (pad, pad), (pad, pad), (0, 0)),
                 constant_values=pad_value)
    Ho = (H + 2 * pad - kh) // stride + 1
    Wo = (W + 2 * pad - kw) // stride + 1
    cols = []
    for dy in range(kh):
        for dx in range(kw):
            cols.append(xp[:, dy:dy + stride * (Ho - 1) + 1:stride,
                           dx:dx + stride * (Wo - 1) + 1:stride, :])
    return cols, Ho, Wo


def conv_bn_act(x, w, bn_scale, bn_shift, stride, pad, act, residual=None):
    """Conv2d(bias=False) + folded BatchNorm2d + (residual) + activation."""
    kh, kw, cin, cout = w.shape
    B = x.shape[0]
    if kh == 1 and kw == 1 and pad == 0:
        # 1x1 conv: no im2col at all (dominant case in bottlenecks).
        if stride != 1:
            x = x[:, ::stride, ::stride, :]
        Ho, Wo = x.shape[1], x.shape[2]
        a = x.reshape(B * Ho * Wo, cin)
    else:
        cols, Ho, Wo = _im2col(x, kh, kw, stride, pad, pad_value=0.0)
        a = jnp.concatenate(cols, axis=-1).reshape(B * Ho * Wo, kh * kw * cin)
    wm = w.reshape(kh * kw * cin, cout)
    res2d = None
    if residual is not None:
        res2d = residual.reshape(B * Ho * Wo, cout)
    y = matmul_affine_act(a, wm, bn_scale, bn_shift, act=act, residual=res2d)
    return y.reshape(B, Ho, Wo, cout)


def maxpool_3x3_s2(x):
    """MaxPool2d(kernel=3, stride=2, padding=1)."""
    B, H, W, C = x.shape
    cols, Ho, Wo = _im2col(x, 3, 3, 2, 1, pad_value=-jnp.inf)
    M = B * Ho * Wo
    y = _max9([c.reshape(M, C) for c in cols])
    return y.reshape(B, Ho, Wo, C)


def bottleneck_forward(x, p):
    if "ds_conv" in p:
        identity = conv_bn_act(x, p["ds_conv"], *p["ds_bn"],
                               stride=p["stride"], pad=0, act="none")
    else:
        identity = x
    out = conv_bn_act(x, p["conv1"], *p["bn1"], stride=1, pad=0, act="relu")
    out = conv_bn_act(out, p["conv2"], *p["bn2"], stride=p["stride"], pad=1, act="relu")
    # conv3 + BN + residual add + ReLU fused into one kernel epilogue.
    out = conv_bn_act(out, p["conv3"], *p["bn3"], stride=1, pad=0,
                      act="relu", residual=identity)
    return out


# ----------------------------- parameter init ------------------------------

def _init_conv(key, kh, kw, cin, cout):
    fan_in = kh * kw * cin
    return jax.random.normal(key, (kh, kw, cin, cout), jnp.float32) * \
        (2.0 / fan_in) ** 0.5 * 0.5


def _init_bn(key, c):
    k1, k2 = jax.random.split(key)
    scale = 1.0 + 0.1 * jax.random.normal(k1, (c,), jnp.float32)
    shift = 0.1 * jax.random.normal(k2, (c,), jnp.float32)
    return scale, shift


def _init_linear(key, cin, cout):
    k1, k2 = jax.random.split(key)
    w = jax.random.normal(k1, (cin, cout), jnp.float32) * (1.0 / cin) ** 0.5
    b = 0.01 * jax.random.normal(k2, (cout,), jnp.float32)
    return w, b


def make_bottleneck_params(key, cin, planes, stride):
    cout = planes * 4
    ks = jax.random.split(key, 8)
    p = {
        "conv1": _init_conv(ks[0], 1, 1, cin, planes), "bn1": _init_bn(ks[1], planes),
        "conv2": _init_conv(ks[2], 3, 3, planes, planes), "bn2": _init_bn(ks[3], planes),
        "conv3": _init_conv(ks[4], 1, 1, planes, cout), "bn3": _init_bn(ks[5], cout),
        "stride": stride,
    }
    if stride != 1 or cin != cout:
        p["ds_conv"] = _init_conv(ks[6], 1, 1, cin, cout)
        p["ds_bn"] = _init_bn(ks[7], cout)
    return p


def make_layer_params(key, cin, planes, blocks, stride):
    ks = jax.random.split(key, blocks)
    params = [make_bottleneck_params(ks[0], cin, planes, stride)]
    cin = planes * 4
    for i in range(1, blocks):
        params.append(make_bottleneck_params(ks[i], cin, planes, 1))
    return params


def init_ft_net_middle(key, class_num=10, width=8, bottleneck_dim=64):
    ks = jax.random.split(key, 8)
    params = {
        "conv1": _init_conv(ks[0], 7, 7, 3, width),
        "bn1": _init_bn(ks[1], width),
        "layer1": make_layer_params(ks[2], width, width, 3, 1),
        "layer2": make_layer_params(ks[3], width * 4, width * 2, 4, 2),
        "layer3": make_layer_params(ks[4], width * 8, width * 4, 6, 2),
        "layer4": make_layer_params(ks[5], width * 16, width * 8, 3, 2),
    }
    feat_dim = width * 16 + width * 32  # layer3 out + layer4 out (1024+2048 analog)
    kc = jax.random.split(ks[6], 3)
    params["fc1_w"], params["fc1_b"] = _init_linear(kc[0], feat_dim, bottleneck_dim)
    params["fc1_bn"] = _init_bn(kc[1], bottleneck_dim)
    params["fc2_w"], params["fc2_b"] = _init_linear(kc[2], bottleneck_dim, class_num)
    return params


# ------------------------------- forward -----------------------------------

def ft_net_middle_forward(params, x_nchw):
    # NCHW (PyTorch) -> NHWC (kernel layout)
    x = jnp.transpose(x_nchw, (0, 2, 3, 1)).astype(jnp.float32)

    # stem: conv1 7x7/2 + bn1 + relu + maxpool 3x3/2
    x = conv_bn_act(x, params["conv1"], *params["bn1"], stride=2, pad=3, act="relu")
    x = maxpool_3x3_s2(x)

    for p in params["layer1"]:
        x = bottleneck_forward(x, p)
    for p in params["layer2"]:
        x = bottleneck_forward(x, p)
    for p in params["layer3"]:
        x = bottleneck_forward(x, p)

    B, H, W, C = x.shape
    x0 = global_avg_pool(x.reshape(B, H * W, C))        # mid-level feature

    for p in params["layer4"]:
        x = bottleneck_forward(x, p)
    B, H, W, C = x.shape
    x1 = global_avg_pool(x.reshape(B, H * W, C))        # high-level feature

    f = jnp.concatenate([x0, x1], axis=1)               # torch.cat((x0, x1), 1).view(B, -1)

    bn_scale, bn_shift = params["fc1_bn"]
    out = classblock_forward(f, params["fc1_w"], params["fc1_b"],
                             bn_scale, bn_shift,
                             params["fc2_w"], params["fc2_b"])
    return out


# --------------------------------------------------------------------------

if __name__ == "__main__":
    key = jax.random.PRNGKey(0)
    pkey, xkey = jax.random.split(key)

    class_num = 10
    params = init_ft_net_middle(pkey, class_num=class_num, width=8, bottleneck_dim=64)

    # PyTorch-style NCHW input
    x = jax.random.normal(xkey, (2, 3, 64, 64), jnp.float32)

    out = ft_net_middle_forward(params, x)
    out = jax.block_until_ready(out)
    assert out.shape == (2, class_num), out.shape
    assert jnp.all(jnp.isfinite(out))
    print("KERNEL_OK")
</pallas_src>

<mosaic_0001>
module attributes {stable_mosaic.version = 11 : i64} {
  func.func @_fused_matmul_kernel(%arg0: i32, %arg1: i32, %arg2: i32, %arg3: memref<512x256xbf16, #tpu.memory_space<vmem>>, %arg4: memref<256x128xbf16, #tpu.memory_space<vmem>>, %arg5: memref<1x128xf32, #tpu.memory_space<vmem>>, %arg6: memref<1x128xf32, #tpu.memory_space<vmem>>, %arg7: memref<512x128xf32, #tpu.memory_space<vmem>>, %arg8: memref<512x128xf32, #tpu.memory_space<vmem>>) attributes {dimension_semantics = [#tpu.dimension_semantics<parallel>, #tpu.dimension_semantics<parallel>, #tpu.dimension_semantics<arbitrary>], iteration_bounds = array<i64: 4, 1, 1>, scalar_prefetch = 0 : i64, scratch_operands = 1 : i64, tpu.core_type = #tpu.core_type<tc>, window_params = [{transform_indices = @transform_0, window_bounds = array<i64: 512, 256>}, {transform_indices = @transform_1, window_bounds = array<i64: 256, 128>}, {transform_indices = @transform_2, window_bounds = array<i64: 1, 128>}, {transform_indices = @transform_3, window_bounds = array<i64: 1, 128>}, {transform_indices = @transform_4, window_bounds = array<i64: 512, 128>}]} {
    %c0_i32 = arith.constant 0 : i32
    %0 = arith.cmpi eq, %arg2, %c0_i32 : i32
    %1 = arith.extui %0 : i1 to i32
    %c0_i32_0 = arith.constant 0 : i32
    %2 = arith.cmpi ne, %1, %c0_i32_0 : i32
    scf.if %2 {
      %cst_10 = arith.constant 0.000000e+00 : f32
      %12 = vector.broadcast %cst_10 : f32 to vector<512x128xf32>
      %c0_11 = arith.constant 0 : index
      %c0_12 = arith.constant 0 : index
      %13 = vector.load %arg8[%c0_11, %c0_12] : memref<512x128xf32, #tpu.memory_space<vmem>>, vector<512x128xf32>
      tpu.vector_store %arg8[%c0_11, %c0_12], %12 {strides = array<i32>} : memref<512x128xf32, #tpu.memory_space<vmem>>, vector<512x128xf32>,
    } else {
    }
    %c0 = arith.constant 0 : index
    %c0_1 = arith.constant 0 : index
    %3 = vector.load %arg8[%c0, %c0_1] : memref<512x128xf32, #tpu.memory_space<vmem>>, vector<512x128xf32>
    %c0_2 = arith.constant 0 : index
    %c0_3 = arith.constant 0 : index
    %4 = vector.load %arg3[%c0_2, %c0_3] : memref<512x256xbf16, #tpu.memory_space<vmem>>, vector<512x256xbf16>
    %c0_4 = arith.constant 0 : index
    %c0_5 = arith.constant 0 : index
    %5 = vector.load %arg4[%c0_4, %c0_5] : memref<256x128xbf16, #tpu.memory_space<vmem>>, vector<256x128xbf16>
    %cst = arith.constant dense<0.000000e+00> : vector<512x128xf32>
    %6 = tpu.matmul %4, %5, %cst {dimension_numbers = #tpu.dot_dimension_numbers<[1], [0], [0], [1], [0, 0, 1, 1], [], []>} : vector<512x256xbf16>, vector<256x128xbf16>, vector<512x128xf32> -> vector<512x128xf32>
    %7 = arith.addf %3, %6 : vector<512x128xf32>
    %c0_6 = arith.constant 0 : index
    %c0_7 = arith.constant 0 : index
    %8 = vector.load %arg8[%c0_6, %c0_7] : memref<512x128xf32, #tpu.memory_space<vmem>>, vector<512x128xf32>
    tpu.vector_store %arg8[%c0_6, %c0_7], %7 {strides = array<i32>} : memref<512x128xf32, #tpu.memory_space<vmem>>, vector<512x128xf32>,
    %c0_i32_8 = arith.constant 0 : i32
    %9 = arith.cmpi eq, %arg2, %c0_i32_8 : i32
    %10 = arith.extui %9 : i1 to i32
    %c0_i32_9 = arith.constant 0 : i32
    %11 = arith.cmpi ne, %10, %c0_i32_9 : i32
    scf.if %11 {
      %c0_10 = arith.constant 0 : index
      %c0_11 = arith.constant 0 : index
      %12 = vector.load %arg8[%c0_10, %c0_11] : memref<512x128xf32, #tpu.memory_space<vmem>>, vector<512x128xf32>
      %c0_12 = arith.constant 0 : index
      %c0_13 = arith.constant 0 : index
      %13 = vector.load %arg5[%c0_12, %c0_13] : memref<1x128xf32, #tpu.memory_space<vmem>>, vector<1x128xf32>
      %14 = vector.broadcast %13 : vector<1x128xf32> to vector<512x128xf32>
      %15 = arith.mulf %12, %14 : vector<512x128xf32>
      %c0_14 = arith.constant 0 : index
      %c0_15 = arith.constant 0 : index
      %16 = vector.load %arg6[%c0_14, %c0_15] : memref<1x128xf32, #tpu.memory_space<vmem>>, vector<1x128xf32>
      %17 = vector.broadcast %16 : vector<1x128xf32> to vector<512x128xf32>
      %18 = arith.addf %15, %17 : vector<512x128xf32>
      %cst_16 = arith.constant 0.000000e+00 : f32
      %19 = vector.broadcast %cst_16 : f32 to vector<512x128xf32>
      %20 = arith.maximumf %18, %19 : vector<512x128xf32>
      %c0_17 = arith.constant 0 : index
      %c0_18 = arith.constant 0 : index
      %21 = vector.load %arg7[%c0_17, %c0_18] : memref<512x128xf32, #tpu.memory_space<vmem>>, vector<512x128xf32>
      tpu.vector_store %arg7[%c0_17, %c0_18], %20 {strides = array<i32>} : memref<512x128xf32, #tpu.memory_space<vmem>>, vector<512x128xf32>,
    } else {
    }
    return
  }
  func.func @transform_0(%arg0: i32, %arg1: i32, %arg2: i32) -> (i32, i32) {
    %c0_i32 = arith.constant 0 : i32
    return %arg0, %arg2 : i32, i32
  }
  func.func @transform_1(%arg0: i32, %arg1: i32, %arg2: i32) -> (i32, i32) {
    %c0_i32 = arith.constant 0 : i32
    return %arg2, %arg1 : i32, i32
  }
  func.func @transform_2(%arg0: i32, %arg1: i32, %arg2: i32) -> (i32, i32) {
    %c0_i32 = arith.constant 0 : i32
    %c0_i32_0 = arith.constant 0 : i32
    return %c0_i32, %arg1 : i32, i32
  }
  func.func @transform_3(%arg0: i32, %arg1: i32, %arg2: i32) -> (i32, i32) {
    %c0_i32 = arith.constant 0 : i32
    %c0_i32_0 = arith.constant 0 : i32
    return %c0_i32, %arg1 : i32, i32
  }
  func.func @transform_4(%arg0: i32, %arg1: i32, %arg2: i32) -> (i32, i32) {
    %c0_i32 = arith.constant 0 : i32
    return %arg0, %arg1 : i32, i32
  }
}

</mosaic_0001>

<bundles_post_ra>
// kernel: _mm_nores.1
= control target key start
LH: loop header
LB: loop body
LE: loop exit
PB: predicated region body
PF: predicated region fallthrough
CT: control target
= control target key end

     0   :  { %s2150_s15 = smov 0   ;;  %s2152_s16 = smov 0   ;;  %s2540_s0 = inlined_call_operand.vmem [shape: bf16[2048,256], index: 0, kind: input, shape index: {}]   ;;  %s2541_s1 = inlined_call_operand.vmem [shape: bf16[256,128], index: 1, kind: input, shape index: {}]   ;;  %s2542_s2 = inlined_call_operand.vmem [shape: f32[1,128], index: 2, kind: input, shape index: {}]   ;;  %s2543_s3 = inlined_call_operand.vmem [shape: f32[1,128], index: 3, kind: input, shape index: {}]   ;;  %s2544_s4 = inlined_call_operand.vmem [shape: f32[2048,128], index: 4, kind: output, shape index: {}]  }
   0x1   :  { %s2154_s17 = smov 0  }
   0x2 LB: > { %s33_s18 = sadd.s32 1, %s2118_s16  ;;  %p1840_p0 = scmp.ge.s32.totalorder %s2122_s17, 1  ;;  %s2122_s17 = sphi %s2154_s17, %s14_s17   ;;  %s2118_s16 = sphi %s2152_s16, %s2546_s16   ;;  %s2114_s15 = sphi %s2150_s15, %s2545_s15  }
   0x3   : > { %p35_p1 = scmp.ge.s32.totalorder %s33_s18, 4  ;;  %p224_p2 = scmp.lt.s32.totalorder %s2122_s17, 5 }
   0x5   : > { %s2548_s18 = smov (%p35_p1, %s33_s18), 0  ;;  %p225_p3 = pnand %p1840_p0, %p224_p2 }
   0x6   : > { %s1841_s21 = sshll.u32 (!%p225_p3), %s2114_s15, 6 }
   0x7   : > { %228 = sbr.rel (%p225_p3) target bundleno = 401 (0x191), region = 36  ;;  %p274_p4 = scmp.lt.s32.totalorder (!%p225_p3), %s1841_s21, 255 }
   0xc   : > { %v1988_v0 = vld [vmem:[%s2541_s1 + $0x38] sm:$0xff]   ;;  %v2124_v1 = vmov 0   ;;  %v1989_v2 = vld [vmem:[%s2541_s1 + $0x30] sm:$0xff]   ;;  %v1990_v3 = vld [vmem:[%s2541_s1 + $0x28] sm:$0xff]   ;;  %s2550_s21 = smov (!%p274_p4, %s1841_s21), 255 }
   0xd   : > { %953 = vmatprep.subr.bf16.mxu0 %v2124_v1  ;;  %1931 = vmatprep.subr.bf16.mxu1 %v2124_v1  ;;  %v1991_v4 = vld [vmem:[%s2541_s1 + $0x20] sm:$0xff]   ;;  %s1930_s28 = sshll.u32 %s2550_s21, 3  ;;  %v1992_v5 = vld [vmem:[%s2541_s1 + $0x18] sm:$0xff]   ;;  %v1993_v7 = vld [vmem:[%s2541_s1 + $0x10] sm:$0xff]  }
   0xe   : > { %954 = vmatpush1.bf16.msra.mxu0 %v1988_v0  ;;  %1947 = vmatpush1.bf16.msra.mxu1 %v1988_v0  ;;  %s2199_s7 = scalar_lea.vmem %s2540_s0, %s1930_s28  ;;  %v1994_v9 = vld [vmem:[%s2541_s1 + $0x8] sm:$0xff]   ;;  %v1995_v10 = vld [vmem:[%s2541_s1] sm:$0xff]   ;;  %v1996_v11 = vld [vmem:[%s2541_s1 + $0x78] sm:$0xff]   ;;  %s2341_s15 = scalar_lea.vmem %s2544_s4, %s1930_s28 }
   0xf   : > { %955 = vmatprep.subr.bf16.mxu0 %v2124_v1  ;;  %1932 = vmatprep.subr.bf16.mxu1 %v2124_v1  ;;  %v2006_v6 = vld [vmem:[%s2199_s7 + $0x4] ss:$8 sps:$4 sm:$0xff]   ;;  %v1997_v12 = vld [vmem:[%s2541_s1 + $0x70] sm:$0xff]   ;;  %v2000_v15 = vld [vmem:[%s2541_s1 + $0x58] sm:$0xff]  }
  0x10   : > { %v2009_v8 = vld [vmem:[%s2199_s7 + $0x104] ss:$8 sps:$4 sm:$0xff]   ;;  %985 = vmatprep.mubr.bf16.mxu0 %v2006_v6  ;;  %v2001_v16 = vld [vmem:[%s2541_s1 + $0x50] sm:$0xff]   ;;  %v2004_v19 = vld [vmem:[%s2199_s7] ss:$8 sps:$4 sm:$0xff]  }
  0x11   : > { %1113 = vmatprep.mubr.bf16.mxu1 %v2009_v8  ;;  %v1998_v13 = vld [vmem:[%s2541_s1 + $0x68] sm:$0xff]   ;;  %v1999_v14 = vld [vmem:[%s2541_s1 + $0x60] sm:$0xff]   ;;  %v2010_v21 = vld [vmem:[%s2199_s7 + $0x14] ss:$8 sps:$4 sm:$0xff]  }
  0x12   : > { %956 = vmatpush1.bf16.msra.mxu0 %v1989_v2  ;;  %1948 = vmatpush1.bf16.msra.mxu1 %v1989_v2  ;;  %v2002_v17 = vld [vmem:[%s2541_s1 + $0x48] sm:$0xff]   ;;  %v2003_v18 = vld [vmem:[%s2541_s1 + $0x40] sm:$0xff]   ;;  %v2012_v22 = vld [vmem:[%s2199_s7 + $0x114] ss:$8 sps:$4 sm:$0xff]  }
  0x13   : > { %957 = vmatprep.subr.bf16.mxu0 %v2124_v1  ;;  %1933 = vmatprep.subr.bf16.mxu1 %v2124_v1  ;;  %v2007_v20 = vld [vmem:[%s2199_s7 + $0x100] ss:$8 sps:$4 sm:$0xff]   ;;  %v2014_v23 = vld [vmem:[%s2199_s7 + $0x10] ss:$8 sps:$4 sm:$0xff]   ;;  %v2016_v25 = vld [vmem:[%s2199_s7 + $0x24] ss:$8 sps:$4 sm:$0xff]  }
  0x14   : > { %v2015_v24 = vld [vmem:[%s2199_s7 + $0x110] ss:$8 sps:$4 sm:$0xff]   ;;  %v2018_v26 = vld [vmem:[%s2199_s7 + $0x124] ss:$8 sps:$4 sm:$0xff]   ;;  %v2020_v27 = vld [vmem:[%s2199_s7 + $0x20] ss:$8 sps:$4 sm:$0xff]  }
  0x15   : > { %v2021_v28 = vld [vmem:[%s2199_s7 + $0x120] ss:$8 sps:$4 sm:$0xff]   ;;  %v2022_v29 = vld [vmem:[%s2199_s7 + $0x34] ss:$8 sps:$4 sm:$0xff]   ;;  %v2026_v31 = vld [vmem:[%s2199_s7 + $0x30] ss:$8 sps:$4 sm:$0xff]  }
  0x16   : > { %958 = vmatpush1.bf16.msra.mxu0 %v1990_v3  ;;  %1949 = vmatpush1.bf16.msra.mxu1 %v1990_v3  ;;  %v2024_v30 = vld [vmem:[%s2199_s7 + $0x134] ss:$8 sps:$4 sm:$0xff]   ;;  %v2027_v32 = vld [vmem:[%s2199_s7 + $0x130] ss:$8 sps:$4 sm:$0xff]   ;;  %v2028_v33 = vld [vmem:[%s2199_s7 + $0x44] ss:$8 sps:$4 sm:$0xff]  }
  0x17   : > { %959 = vmatprep.subr.bf16.mxu0 %v2124_v1  ;;  %1934 = vmatprep.subr.bf16.mxu1 %v2124_v1  ;;  %v2030_v34 = vld [vmem:[%s2199_s7 + $0x144] ss:$8 sps:$4 sm:$0xff]   ;;  %v2032_v35 = vld [vmem:[%s2199_s7 + $0x40] ss:$8 sps:$4 sm:$0xff]   ;;  %v2034_v37 = vld [vmem:[%s2199_s7 + $0x54] ss:$8 sps:$4 sm:$0xff]  }
  0x18   : > { %v2033_v36 = vld [vmem:[%s2199_s7 + $0x140] ss:$8 sps:$4 sm:$0xff]   ;;  %v2036_v38 = vld [vmem:[%s2199_s7 + $0x154] ss:$8 sps:$4 sm:$0xff]   ;;  %v2038_v39 = vld [vmem:[%s2199_s7 + $0x50] ss:$8 sps:$4 sm:$0xff]  }
  0x19   : > { %v2039_v40 = vld [vmem:[%s2199_s7 + $0x150] ss:$8 sps:$4 sm:$0xff]   ;;  %v2040_v41 = vld [vmem:[%s2199_s7 + $0x64] ss:$8 sps:$4 sm:$0xff]   ;;  %v2044_v43 = vld [vmem:[%s2199_s7 + $0x60] ss:$8 sps:$4 sm:$0xff]  }
  0x1a   : > { %960 = vmatpush1.bf16.msra.mxu0 %v1991_v4  ;;  %1950 = vmatpush1.bf16.msra.mxu1 %v1991_v4  ;;  %v2042_v42 = vld [vmem:[%s2199_s7 + $0x164] ss:$8 sps:$4 sm:$0xff]   ;;  %v2045_v44 = vld [vmem:[%s2199_s7 + $0x160] ss:$8 sps:$4 sm:$0xff]   ;;  %v2046_v45 = vld [vmem:[%s2199_s7 + $0x74] ss:$8 sps:$4 sm:$0xff]  }
  0x1b   : > { %961 = vmatprep.subr.bf16.mxu0 %v2124_v1  ;;  %1935 = vmatprep.subr.bf16.mxu1 %v2124_v1  ;;  %v2048_v46 = vld [vmem:[%s2199_s7 + $0x174] ss:$8 sps:$4 sm:$0xff]   ;;  %v2050_v47 = vld [vmem:[%s2199_s7 + $0x70] ss:$8 sps:$4 sm:$0xff]   ;;  %v2052_v49 = vld [vmem:[%s2199_s7 + $0x84] ss:$8 sps:$4 sm:$0xff]  }
  0x1c   : > { %v2051_v48 = vld [vmem:[%s2199_s7 + $0x170] ss:$8 sps:$4 sm:$0xff]   ;;  %v2054_v50 = vld [vmem:[%s2199_s7 + $0x184] ss:$8 sps:$4 sm:$0xff]   ;;  %v2056_v51 = vld [vmem:[%s2199_s7 + $0x80] ss:$8 sps:$4 sm:$0xff]  }
  0x1d   : > { %v2057_v52 = vld [vmem:[%s2199_s7 + $0x180] ss:$8 sps:$4 sm:$0xff]   ;;  %v2058_v53 = vld [vmem:[%s2199_s7 + $0x94] ss:$8 sps:$4 sm:$0xff]   ;;  %v2062_v55 = vld [vmem:[%s2199_s7 + $0x90] ss:$8 sps:$4 sm:$0xff]  }
  0x1e   : > { %962 = vmatpush1.bf16.msra.mxu0 %v1992_v5  ;;  %1951 = vmatpush1.bf16.msra.mxu1 %v1992_v5  ;;  %v2060_v54 = vld [vmem:[%s2199_s7 + $0x194] ss:$8 sps:$4 sm:$0xff]   ;;  %v2063_v56 = vld [vmem:[%s2199_s7 + $0x190] ss:$8 sps:$4 sm:$0xff]   ;;  %v2064_v57 = vld [vmem:[%s2199_s7 + $0xa4] ss:$8 sps:$4 sm:$0xff]  }
  0x1f   : > { %963 = vmatprep.subr.bf16.mxu0 %v2124_v1  ;;  %1936 = vmatprep.subr.bf16.mxu1 %v2124_v1  ;;  %v2066_v58 = vld [vmem:[%s2199_s7 + $0x1a4] ss:$8 sps:$4 sm:$0xff]   ;;  %v2068_v59 = vld [vmem:[%s2199_s7 + $0xa0] ss:$8 sps:$4 sm:$0xff]   ;;  %v2070_v61 = vld [vmem:[%s2199_s7 + $0xb4] ss:$8 sps:$4 sm:$0xff]  }
  0x20   : > { %v2069_v60 = vld [vmem:[%s2199_s7 + $0x1a0] ss:$8 sps:$4 sm:$0xff]   ;;  %v2072_v62 = vld [vmem:[%s2199_s7 + $0x1b4] ss:$8 sps:$4 sm:$0xff]   ;;  %v2074_v63 = vld [vmem:[%s2199_s7 + $0xb0] ss:$8 sps:$4 sm:$0xff]  }
  0x21   : > { %v2075_v0 = vld [vmem:[%s2199_s7 + $0x1b0] ss:$8 sps:$4 sm:$0xff]   ;;  %v2078_v2 = vld [vmem:[%s2199_s7 + $0x1c4] ss:$8 sps:$4 sm:$0xff]   ;;  %v2080_v3 = vld [vmem:[%s2199_s7 + $0xc0] ss:$8 sps:$4 sm:$0xff]  }
  0x22   : > { %964 = vmatpush1.bf16.msra.mxu0 %v1993_v7  ;;  %1952 = vmatpush1.bf16.msra.mxu1 %v1993_v7  ;;  %v2081_v4 = vld [vmem:[%s2199_s7 + $0x1c0] ss:$8 sps:$4 sm:$0xff]   ;;  %v2082_v5 = vld [vmem:[%s2199_s7 + $0xd4] ss:$8 sps:$4 sm:$0xff]   ;;  %v2086_v7 = vld [vmem:[%s2199_s7 + $0xd0] ss:$8 sps:$4 sm:$0xff]  }
  0x23   : > { %965 = vmatprep.subr.bf16.mxu0 %v2124_v1  ;;  %1937 = vmatprep.subr.bf16.mxu1 %v2124_v1  ;;  %v2084_v6 = vld [vmem:[%s2199_s7 + $0x1d4] ss:$8 sps:$4 sm:$0xff]   ;;  %v2087_v8 = vld [vmem:[%s2199_s7 + $0x1d0] ss:$8 sps:$4 sm:$0xff]  }
  0x26   : > { %966 = vmatpush1.bf16.msra.mxu0 %v1994_v9  ;;  %1953 = vmatpush1.bf16.msra.mxu1 %v1994_v9  ;;  %v2088_v9 = vld [vmem:[%s2199_s7 + $0xe4] ss:$8 sps:$4 sm:$0xff]  }
  0x27   : > { %967 = vmatprep.subr.bf16.mxu0 %v2124_v1  ;;  %1938 = vmatprep.subr.bf16.mxu1 %v2124_v1 }
  0x2a   : > { %968 = vmatpush1.bf16.msra.mxu0 %v1995_v10  ;;  %1954 = vmatpush1.bf16.msra.mxu1 %v1995_v10  ;;  %v2090_v10 = vld [vmem:[%s2199_s7 + $0x1e4] ss:$8 sps:$4 sm:$0xff]  }
  0x2b   : > { %969 = vmatprep.subr.bf16.mxu0 %v2124_v1  ;;  %1939 = vmatprep.subr.bf16.mxu1 %v2124_v1 }
  0x2e   : > { %970 = vmatpush2.bf16.msra.mxu0 %v1996_v11  ;;  %1955 = vmatpush2.bf16.msra.mxu1 %v1996_v11  ;;  %v2092_v11 = vld [vmem:[%s2199_s7 + $0xe0] ss:$8 sps:$4 sm:$0xff]  }
  0x2f   : > { %971 = vmatprep.subr.bf16.mxu0 %v2124_v1  ;;  %1940 = vmatprep.subr.bf16.mxu1 %v2124_v1 }
  0x32   : > { %972 = vmatpush2.bf16.msra.mxu0 %v1997_v12  ;;  %1956 = vmatpush2.bf16.msra.mxu1 %v1997_v12  ;;  %v2093_v12 = vld [vmem:[%s2199_s7 + $0x1e0] ss:$8 sps:$4 sm:$0xff]  }
  0x33   : > { %973 = vmatprep.subr.bf16.mxu0 %v2124_v1  ;;  %1941 = vmatprep.subr.bf16.mxu1 %v2124_v1 }
  0x36   : > { %974 = vmatpush2.bf16.msra.mxu0 %v1998_v13  ;;  %1957 = vmatpush2.bf16.msra.mxu1 %v1998_v13  ;;  %v2094_v13 = vld [vmem:[%s2199_s7 + $0xf4] ss:$8 sps:$4 sm:$0xff]  }
  0x37   : > { %975 = vmatprep.subr.bf16.mxu0 %v2124_v1  ;;  %1942 = vmatprep.subr.bf16.mxu1 %v2124_v1 }
  0x3a   : > { %976 = vmatpush2.bf16.msra.mxu0 %v1999_v14  ;;  %1958 = vmatpush2.bf16.msra.mxu1 %v1999_v14  ;;  %v2096_v14 = vld [vmem:[%s2199_s7 + $0x1f4] ss:$8 sps:$4 sm:$0xff]  }
  0x3b   : > { %977 = vmatprep.subr.bf16.mxu0 %v2124_v1  ;;  %1943 = vmatprep.subr.bf16.mxu1 %v2124_v1 }
  0x3e   : > { %978 = vmatpush2.bf16.msra.mxu0 %v2000_v15  ;;  %1959 = vmatpush2.bf16.msra.mxu1 %v2000_v15  ;;  %v2098_v15 = vld [vmem:[%s2199_s7 + $0xf0] ss:$8 sps:$4 sm:$0xff]  }
  0x3f   : > { %979 = vmatprep.subr.bf16.mxu0 %v2124_v1  ;;  %1944 = vmatprep.subr.bf16.mxu1 %v2124_v1 }
  0x42   : > { %980 = vmatpush2.bf16.msra.mxu0 %v2001_v16  ;;  %1960 = vmatpush2.bf16.msra.mxu1 %v2001_v16  ;;  %v2099_v16 = vld [vmem:[%s2199_s7 + $0x1f0] ss:$8 sps:$4 sm:$0xff]  }
  0x43   : > { %981 = vmatprep.subr.bf16.mxu0 %v2124_v1  ;;  %1945 = vmatprep.subr.bf16.mxu1 %v2124_v1 }
  0x46   : > { %982 = vmatpush2.bf16.msra.mxu0 %v2002_v17  ;;  %1961 = vmatpush2.bf16.msra.mxu1 %v2002_v17  ;;  %v2325_v17 = vld [vmem:[%s2542_s2] ss:$0 sm:$0xff] }
  0x47   : > { %983 = vmatprep.subr.bf16.mxu0 %v2124_v1  ;;  %1946 = vmatprep.subr.bf16.mxu1 %v2124_v1  ;;  %v2076_v1 = vld [vmem:[%s2199_s7 + $0xc4] ss:$8 sps:$4 sm:$0xff]  }
  0x4a   : > { %984 = vmatpush2.bf16.msra.mxu0 %v2003_v18  ;;  %1962 = vmatpush2.bf16.msra.mxu1 %v2003_v18 }
  0x4d   : > { %986 = vmatmul.mubr.bf16.vlgmr.msra.gmra.mxu0 %v2004_v19  ;;  %1114 = vmatmul.mubr.bf16.vlgmr.msra.gmra.mxu1 %v2007_v20  ;;  %v2330_v19 = vld [vmem:[%s2543_s3] ss:$0 sm:$0xff] }
  0x4e   : > { %993 = vmatprep.mubr.bf16.mxu0 %v2010_v21  ;;  %1121 = vmatprep.mubr.bf16.mxu1 %v2012_v22 }
  0x55   : > { %994 = vmatmul.mubr.bf16.gmra.mxu0 %v2014_v23  ;;  %1122 = vmatmul.mubr.bf16.gmra.mxu1 %v2015_v24 }
  0x56   : > { %1001 = vmatprep.mubr.bf16.mxu0 %v2016_v25  ;;  %1129 = vmatprep.mubr.bf16.mxu1 %v2018_v26 }
  0x5d   : > { %1002 = vmatmul.mubr.bf16.gmra.mxu0 %v2020_v27  ;;  %1130 = vmatmul.mubr.bf16.gmra.mxu1 %v2021_v28 }
  0x5e   : > { %1009 = vmatprep.mubr.bf16.mxu0 %v2022_v29  ;;  %1137 = vmatprep.mubr.bf16.mxu1 %v2024_v30 }
  0x65   : > { %1010 = vmatmul.mubr.bf16.gmra.mxu0 %v2026_v31  ;;  %1138 = vmatmul.mubr.bf16.gmra.mxu1 %v2027_v32 }
  0x66   : > { %1017 = vmatprep.mubr.bf16.mxu0 %v2028_v33  ;;  %1145 = vmatprep.mubr.bf16.mxu1 %v2030_v34 }
  0x6d   : > { %1018 = vmatmul.mubr.bf16.gmra.mxu0 %v2032_v35  ;;  %1146 = vmatmul.mubr.bf16.gmra.mxu1 %v2033_v36 }
  0x6e   : > { %1025 = vmatprep.mubr.bf16.mxu0 %v2034_v37  ;;  %1153 = vmatprep.mubr.bf16.mxu1 %v2036_v38 }
  0x75   : > { %1026 = vmatmul.mubr.bf16.gmra.mxu0 %v2038_v39  ;;  %1154 = vmatmul.mubr.bf16.gmra.mxu1 %v2039_v40 }
  0x76   : > { %1033 = vmatprep.mubr.bf16.mxu0 %v2040_v41  ;;  %1161 = vmatprep.mubr.bf16.mxu1 %v2042_v42 }
  0x7d   : > { %1034 = vmatmul.mubr.bf16.gmra.mxu0 %v2044_v43  ;;  %1162 = vmatmul.mubr.bf16.gmra.mxu1 %v2045_v44 }
  0x7e   : > { %1041 = vmatprep.mubr.bf16.mxu0 %v2046_v45  ;;  %1169 = vmatprep.mubr.bf16.mxu1 %v2048_v46 }
  0x85   : > { %1042 = vmatmul.mubr.bf16.gmra.mxu0 %v2050_v47  ;;  %1170 = vmatmul.mubr.bf16.gmra.mxu1 %v2051_v48 }
  0x86   : > { %1049 = vmatprep.mubr.bf16.mxu0 %v2052_v49  ;;  %1177 = vmatprep.mubr.bf16.mxu1 %v2054_v50 }
  0x8d   : > { %1050 = vmatmul.mubr.bf16.gmra.mxu0 %v2056_v51  ;;  %1178 = vmatmul.mubr.bf16.gmra.mxu1 %v2057_v52 }
  0x8e   : > { %1057 = vmatprep.mubr.bf16.mxu0 %v2058_v53  ;;  %1185 = vmatprep.mubr.bf16.mxu1 %v2060_v54 }
  0x95   : > { %1058 = vmatmul.mubr.bf16.gmra.mxu0 %v2062_v55  ;;  %1186 = vmatmul.mubr.bf16.gmra.mxu1 %v2063_v56 }
  0x96   : > { %1065 = vmatprep.mubr.bf16.mxu0 %v2064_v57  ;;  %1193 = vmatprep.mubr.bf16.mxu1 %v2066_v58 }
  0x9d   : > { %1066 = vmatmul.mubr.bf16.gmra.mxu0 %v2068_v59  ;;  %1194 = vmatmul.mubr.bf16.gmra.mxu1 %v2069_v60 }
  0x9e   : > { %1073 = vmatprep.mubr.bf16.mxu0 %v2070_v61  ;;  %1201 = vmatprep.mubr.bf16.mxu1 %v2072_v62 }
  0xa5   : > { %1074 = vmatmul.mubr.bf16.gmra.mxu0 %v2074_v63  ;;  %1202 = vmatmul.mubr.bf16.gmra.mxu1 %v2075_v0 }
  0xa6   : > { %1081 = vmatprep.mubr.bf16.mxu0 %v2076_v1  ;;  %1209 = vmatprep.mubr.bf16.mxu1 %v2078_v2 }
  0xad   : > { %1082 = vmatmul.mubr.bf16.gmra.mxu0 %v2080_v3  ;;  %1210 = vmatmul.mubr.bf16.gmra.mxu1 %v2081_v4 }
  0xae   : > { %1089 = vmatprep.mubr.bf16.mxu0 %v2082_v5  ;;  %1217 = vmatprep.mubr.bf16.mxu1 %v2084_v6 }
  0xb5   : > { %1090 = vmatmul.mubr.bf16.gmra.mxu0 %v2086_v7  ;;  %1218 = vmatmul.mubr.bf16.gmra.mxu1 %v2087_v8 }
  0xb6   : > { %1097 = vmatprep.mubr.bf16.mxu0 %v2088_v9  ;;  %1225 = vmatprep.mubr.bf16.mxu1 %v2090_v10 }
  0xbd   : > { %1098 = vmatmul.mubr.bf16.gmra.mxu0 %v2092_v11  ;;  %1226 = vmatmul.mubr.bf16.gmra.mxu1 %v2093_v12 }
  0xbe   : > { %1105 = vmatprep.mubr.bf16.mxu0 %v2094_v13  ;;  %1233 = vmatprep.mubr.bf16.mxu1 %v2096_v14 }
  0xc5   : > { %1106 = vmatmul.mubr.bf16.gmra.mxu0 %v2098_v15  ;;  %1234 = vmatmul.mubr.bf16.gmra.mxu1 %v2099_v16 }
 0x10d   : > { %v987_v18 = vpop.f32.mrf.mxu0  ;;  %v1115_v20 = vpop.f32.mrf.mxu1 }
 0x10e   : > { %v1444_v21 = vmul.f32 %v2325_v17, %v987_v18  ;;  %v1476_v22 = vmul.f32 %v2325_v17, %v1115_v20 }
 0x10f   : > { %v989_v23 = vpop.f32.mrf.mxu0  ;;  %v1117_v24 = vpop.f32.mrf.mxu1 }
 0x110   : > { %v1515_v25 = vadd.f32 %v2330_v19, %v1444_v21  ;;  %v1547_v26 = vadd.f32 %v2330_v19, %v1476_v22 }
 0x111   : > { %v990_v27 = vpop.f32.mrf.mxu0  ;;  %v1118_v28 = vpop.f32.mrf.mxu1 }
 0x112   : > { %v1579_v29 = vmax.f32 %v1515_v25, 0.0  ;;  %v1611_v30 = vmax.f32 %v1547_v26, 0.0  ;;  %v1445_v31 = vmul.f32 %v2325_v17, %v990_v27  ;;  %v1477_v32 = vmul.f32 %v2325_v17, %v1118_v28 }
 0x113   : > { %v992_v33 = vpop.f32.mrf.mxu0  ;;  %v1120_v34 = vpop.f32.mrf.mxu1 }
 0x114   : > { %1643 = vst [vmem:[%s2341_s15] sm:$0xff] %v1579_v29  ;;  %1675 = vst [vmem:[%s2341_s15 + $0x100] sm:$0xff] %v1611_v30  ;;  %v1516_v35 = vadd.f32 %v2330_v19, %v1445_v31  ;;  %v1548_v36 = vadd.f32 %v2330_v19, %v1477_v32 }
 0x115   : > { %v995_v37 = vpop.f32.mrf.mxu0  ;;  %v1123_v38 = vpop.f32.mrf.mxu1 }
 0x116   : > { %v1580_v39 = vmax.f32 %v1516_v35, 0.0  ;;  %v1612_v40 = vmax.f32 %v1548_v36, 0.0  ;;  %v1446_v41 = vmul.f32 %v2325_v17, %v995_v37  ;;  %v1478_v42 = vmul.f32 %v2325_v17, %v1123_v38 }
 0x117   : > { %v997_v43 = vpop.f32.mrf.mxu0  ;;  %v1125_v44 = vpop.f32.mrf.mxu1 }
 0x118   : > { %1644 = vst [vmem:[%s2341_s15 + $0x8] sm:$0xff] %v1580_v39  ;;  %1676 = vst [vmem:[%s2341_s15 + $0x108] sm:$0xff] %v1612_v40  ;;  %v1517_v45 = vadd.f32 %v2330_v19, %v1446_v41  ;;  %v1549_v46 = vadd.f32 %v2330_v19, %v1478_v42 }
 0x119   : > { %v998_v47 = vpop.f32.mrf.mxu0  ;;  %v1126_v48 = vpop.f32.mrf.mxu1 }
 0x11a   : > { %v1581_v49 = vmax.f32 %v1517_v45, 0.0  ;;  %v1613_v50 = vmax.f32 %v1549_v46, 0.0  ;;  %v1447_v51 = vmul.f32 %v2325_v17, %v998_v47  ;;  %v1479_v52 = vmul.f32 %v2325_v17, %v1126_v48 }
 0x11b   : > { %v1000_v53 = vpop.f32.mrf.mxu0  ;;  %v1128_v54 = vpop.f32.mrf.mxu1 }
 0x11c   : > { %1645 = vst [vmem:[%s2341_s15 + $0x10] sm:$0xff] %v1581_v49  ;;  %1677 = vst [vmem:[%s2341_s15 + $0x110] sm:$0xff] %v1613_v50  ;;  %v1518_v55 = vadd.f32 %v2330_v19, %v1447_v51  ;;  %v1550_v56 = vadd.f32 %v2330_v19, %v1479_v52 }
 0x11d   : > { %v1003_v57 = vpop.f32.mrf.mxu0  ;;  %v1131_v58 = vpop.f32.mrf.mxu1 }
 0x11e   : > { %v1582_v59 = vmax.f32 %v1518_v55, 0.0  ;;  %v1614_v60 = vmax.f32 %v1550_v56, 0.0  ;;  %v1448_v61 = vmul.f32 %v2325_v17, %v1003_v57  ;;  %v1480_v62 = vmul.f32 %v2325_v17, %v1131_v58 }
 0x11f   : > { %v1005_v63 = vpop.f32.mrf.mxu0  ;;  %v1133_v0 = vpop.f32.mrf.mxu1 }
 0x120   : > { %1646 = vst [vmem:[%s2341_s15 + $0x18] sm:$0xff] %v1582_v59  ;;  %1678 = vst [vmem:[%s2341_s15 + $0x118] sm:$0xff] %v1614_v60  ;;  %v1519_v1 = vadd.f32 %v2330_v19, %v1448_v61  ;;  %v1551_v2 = vadd.f32 %v2330_v19, %v1480_v62 }
 0x121   : > { %v1006_v3 = vpop.f32.mrf.mxu0  ;;  %v1134_v4 = vpop.f32.mrf.mxu1 }
 0x122   : > { %v1583_v5 = vmax.f32 %v1519_v1, 0.0  ;;  %v1615_v6 = vmax.f32 %v1551_v2, 0.0  ;;  %v1449_v7 = vmul.f32 %v2325_v17, %v1006_v3  ;;  %v1481_v8 = vmul.f32 %v2325_v17, %v1134_v4 }
 0x123   : > { %v1008_v9 = vpop.f32.mrf.mxu0  ;;  %v1136_v10 = vpop.f32.mrf.mxu1 }
 0x124   : > { %1647 = vst [vmem:[%s2341_s15 + $0x20] sm:$0xff] %v1583_v5  ;;  %1679 = vst [vmem:[%s2341_s15 + $0x120] sm:$0xff] %v1615_v6  ;;  %v1520_v11 = vadd.f32 %v2330_v19, %v1449_v7  ;;  %v1552_v12 = vadd.f32 %v2330_v19, %v1481_v8 }
 0x125   : > { %v1011_v13 = vpop.f32.mrf.mxu0  ;;  %v1139_v14 = vpop.f32.mrf.mxu1 }
 0x126   : > { %v1584_v15 = vmax.f32 %v1520_v11, 0.0  ;;  %v1616_v16 = vmax.f32 %v1552_v12, 0.0  ;;  %v1450_v18 = vmul.f32 %v2325_v17, %v1011_v13  ;;  %v1482_v20 = vmul.f32 %v2325_v17, %v1139_v14 }
 0x127   : > { %v1013_v21 = vpop.f32.mrf.mxu0  ;;  %v1141_v22 = vpop.f32.mrf.mxu1 }
 0x128   : > { %1648 = vst [vmem:[%s2341_s15 + $0x28] sm:$0xff] %v1584_v15  ;;  %1680 = vst [vmem:[%s2341_s15 + $0x128] sm:$0xff] %v1616_v16  ;;  %v1521_v23 = vadd.f32 %v2330_v19, %v1450_v18  ;;  %v1553_v24 = vadd.f32 %v2330_v19, %v1482_v20 }
 0x129   : > { %v1014_v25 = vpop.f32.mrf.mxu0  ;;  %v1142_v26 = vpop.f32.mrf.mxu1 }
 0x12a   : > { %v1585_v27 = vmax.f32 %v1521_v23, 0.0  ;;  %v1617_v28 = vmax.f32 %v1553_v24, 0.0  ;;  %v1451_v29 = vmul.f32 %v2325_v17, %v1014_v25  ;;  %v1483_v30 = vmul.f32 %v2325_v17, %v1142_v26 }
 0x12b   : > { %v1016_v31 = vpop.f32.mrf.mxu0  ;;  %v1144_v32 = vpop.f32.mrf.mxu1 }
 0x12c   : > { %1649 = vst [vmem:[%s2341_s15 + $0x30] sm:$0xff] %v1585_v27  ;;  %1681 = vst [vmem:[%s2341_s15 + $0x130] sm:$0xff] %v1617_v28  ;;  %v1522_v33 = vadd.f32 %v2330_v19, %v1451_v29  ;;  %v1554_v34 = vadd.f32 %v2330_v19, %v1483_v30 }
 0x12d   : > { %v1019_v35 = vpop.f32.mrf.mxu0  ;;  %v1147_v36 = vpop.f32.mrf.mxu1 }
 0x12e   : > { %v1586_v37 = vmax.f32 %v1522_v33, 0.0  ;;  %v1618_v38 = vmax.f32 %v1554_v34, 0.0  ;;  %v1452_v39 = vmul.f32 %v2325_v17, %v1019_v35  ;;  %v1484_v40 = vmul.f32 %v2325_v17, %v1147_v36 }
 0x12f   : > { %v1021_v41 = vpop.f32.mrf.mxu0  ;;  %v1149_v42 = vpop.f32.mrf.mxu1 }
 0x130   : > { %1650 = vst [vmem:[%s2341_s15 + $0x38] sm:$0xff] %v1586_v37  ;;  %1682 = vst [vmem:[%s2341_s15 + $0x138] sm:$0xff] %v1618_v38  ;;  %v1523_v43 = vadd.f32 %v2330_v19, %v1452_v39  ;;  %v1555_v44 = vadd.f32 %v2330_v19, %v1484_v40 }
 0x131   : > { %v1022_v45 = vpop.f32.mrf.mxu0  ;;  %v1150_v46 = vpop.f32.mrf.mxu1 }
 0x132   : > { %v1587_v47 = vmax.f32 %v1523_v43, 0.0  ;;  %v1619_v48 = vmax.f32 %v1555_v44, 0.0  ;;  %v1453_v49 = vmul.f32 %v2325_v17, %v1022_v45  ;;  %v1485_v50 = vmul.f32 %v2325_v17, %v1150_v46 }
 0x133   : > { %v1024_v51 = vpop.f32.mrf.mxu0  ;;  %v1152_v52 = vpop.f32.mrf.mxu1 }
 0x134   : > { %1651 = vst [vmem:[%s2341_s15 + $0x40] sm:$0xff] %v1587_v47  ;;  %1683 = vst [vmem:[%s2341_s15 + $0x140] sm:$0xff] %v1619_v48  ;;  %v1524_v53 = vadd.f32 %v2330_v19, %v1453_v49  ;;  %v1556_v54 = vadd.f32 %v2330_v19, %v1485_v50 }
 0x135   : > { %v1027_v55 = vpop.f32.mrf.mxu0  ;;  %v1155_v56 = vpop.f32.mrf.mxu1 }
 0x136   : > { %v1588_v57 = vmax.f32 %v1524_v53, 0.0  ;;  %v1620_v58 = vmax.f32 %v1556_v54, 0.0  ;;  %v1454_v59 = vmul.f32 %v2325_v17, %v1027_v55  ;;  %v1486_v60 = vmul.f32 %v2325_v17, %v1155_v56 }
 0x137   : > { %v1029_v61 = vpop.f32.mrf.mxu0  ;;  %v1157_v62 = vpop.f32.mrf.mxu1 }
 0x138   : > { %1652 = vst [vmem:[%s2341_s15 + $0x48] sm:$0xff] %v1588_v57  ;;  %1684 = vst [vmem:[%s2341_s15 + $0x148] sm:$0xff] %v1620_v58  ;;  %v1525_v63 = vadd.f32 %v2330_v19, %v1454_v59  ;;  %v1557_v0 = vadd.f32 %v2330_v19, %v1486_v60 }
 0x139   : > { %v1030_v1 = vpop.f32.mrf.mxu0  ;;  %v1158_v2 = vpop.f32.mrf.mxu1 }
 0x13a   : > { %v1589_v3 = vmax.f32 %v1525_v63, 0.0  ;;  %v1621_v4 = vmax.f32 %v1557_v0, 0.0  ;;  %v1455_v5 = vmul.f32 %v2325_v17, %v1030_v1  ;;  %v1487_v6 = vmul.f32 %v2325_v17, %v1158_v2 }
 0x13b   : > { %v1032_v7 = vpop.f32.mrf.mxu0  ;;  %v1160_v8 = vpop.f32.mrf.mxu1 }
 0x13c   : > { %1653 = vst [vmem:[%s2341_s15 + $0x50] sm:$0xff] %v1589_v3  ;;  %1685 = vst [vmem:[%s2341_s15 + $0x150] sm:$0xff] %v1621_v4  ;;  %v1526_v9 = vadd.f32 %v2330_v19, %v1455_v5  ;;  %v1558_v10 = vadd.f32 %v2330_v19, %v1487_v6 }
 0x13d   : > { %v1035_v11 = vpop.f32.mrf.mxu0  ;;  %v1163_v12 = vpop.f32.mrf.mxu1 }
 0x13e   : > { %v1590_v13 = vmax.f32 %v1526_v9, 0.0  ;;  %v1622_v14 = vmax.f32 %v1558_v10, 0.0  ;;  %v1456_v15 = vmul.f32 %v2325_v17, %v1035_v11  ;;  %v1488_v16 = vmul.f32 %v2325_v17, %v1163_v12 }
 0x13f   : > { %v1037_v18 = vpop.f32.mrf.mxu0  ;;  %v1165_v20 = vpop.f32.mrf.mxu1 }
 0x140   : > { %1654 = vst [vmem:[%s2341_s15 + $0x58] sm:$0xff] %v1590_v13  ;;  %1686 = vst [vmem:[%s2341_s15 + $0x158] sm:$0xff] %v1622_v14  ;;  %v1527_v21 = vadd.f32 %v2330_v19, %v1456_v15  ;;  %v1559_v22 = vadd.f32 %v2330_v19, %v1488_v16 }
 0x141   : > { %v1038_v23 = vpop.f32.mrf.mxu0  ;;  %v1166_v24 = vpop.f32.mrf.mxu1 }
 0x142   : > { %v1591_v25 = vmax.f32 %v1527_v21, 0.0  ;;  %v1623_v26 = vmax.f32 %v1559_v22, 0.0  ;;  %v1457_v27 = vmul.f32 %v2325_v17, %v1038_v23  ;;  %v1489_v28 = vmul.f32 %v2325_v17, %v1166_v24 }
 0x143   : > { %v1040_v29 = vpop.f32.mrf.mxu0  ;;  %v1168_v30 = vpop.f32.mrf.mxu1 }
 0x144   : > { %1655 = vst [vmem:[%s2341_s15 + $0x60] sm:$0xff] %v1591_v25  ;;  %1687 = vst [vmem:[%s2341_s15 + $0x160] sm:$0xff] %v1623_v26  ;;  %v1528_v31 = vadd.f32 %v2330_v19, %v1457_v27  ;;  %v1560_v32 = vadd.f32 %v2330_v19, %v1489_v28 }
 0x145   : > { %v1043_v33 = vpop.f32.mrf.mxu0  ;;  %v1171_v34 = vpop.f32.mrf.mxu1 }
 0x146   : > { %v1592_v35 = vmax.f32 %v1528_v31, 0.0  ;;  %v1624_v36 = vmax.f32 %v1560_v32, 0.0  ;;  %v1458_v37 = vmul.f32 %v2325_v17, %v1043_v33  ;;  %v1490_v38 = vmul.f32 %v2325_v17, %v1171_v34 }
 0x147   : > { %v1045_v39 = vpop.f32.mrf.mxu0  ;;  %v1173_v40 = vpop.f32.mrf.mxu1 }
 0x148   : > { %1656 = vst [vmem:[%s2341_s15 + $0x68] sm:$0xff] %v1592_v35  ;;  %1688 = vst [vmem:[%s2341_s15 + $0x168] sm:$0xff] %v1624_v36  ;;  %v1529_v41 = vadd.f32 %v2330_v19, %v1458_v37  ;;  %v1561_v42 = vadd.f32 %v2330_v19, %v1490_v38 }
 0x149   : > { %v1046_v43 = vpop.f32.mrf.mxu0  ;;  %v1174_v44 = vpop.f32.mrf.mxu1 }
 0x14a   : > { %v1593_v45 = vmax.f32 %v1529_v41, 0.0  ;;  %v1625_v46 = vmax.f32 %v1561_v42, 0.0  ;;  %v1459_v47 = vmul.f32 %v2325_v17, %v1046_v43  ;;  %v1491_v48 = vmul.f32 %v2325_v17, %v1174_v44 }
 0x14b   : > { %v1048_v49 = vpop.f32.mrf.mxu0  ;;  %v1176_v50 = vpop.f32.mrf.mxu1 }
 0x14c   : > { %1657 = vst [vmem:[%s2341_s15 + $0x70] sm:$0xff] %v1593_v45  ;;  %1689 = vst [vmem:[%s2341_s15 + $0x170] sm:$0xff] %v1625_v46  ;;  %v1530_v51 = vadd.f32 %v2330_v19, %v1459_v47  ;;  %v1562_v52 = vadd.f32 %v2330_v19, %v1491_v48 }
 0x14d   : > { %v1051_v53 = vpop.f32.mrf.mxu0  ;;  %v1179_v54 = vpop.f32.mrf.mxu1 }
 0x14e   : > { %v1594_v55 = vmax.f32 %v1530_v51, 0.0  ;;  %v1626_v56 = vmax.f32 %v1562_v52, 0.0  ;;  %v1460_v57 = vmul.f32 %v2325_v17, %v1051_v53  ;;  %v1492_v58 = vmul.f32 %v2325_v17, %v1179_v54 }
 0x14f   : > { %v1053_v59 = vpop.f32.mrf.mxu0  ;;  %v1181_v60 = vpop.f32.mrf.mxu1 }
 0x150   : > { %1658 = vst [vmem:[%s2341_s15 + $0x78] sm:$0xff] %v1594_v55  ;;  %1690 = vst [vmem:[%s2341_s15 + $0x178] sm:$0xff] %v1626_v56  ;;  %v1531_v61 = vadd.f32 %v2330_v19, %v1460_v57  ;;  %v1563_v62 = vadd.f32 %v2330_v19, %v1492_v58 }
 0x151   : > { %v1054_v63 = vpop.f32.mrf.mxu0  ;;  %v1182_v0 = vpop.f32.mrf.mxu1 }
 0x152   : > { %v1595_v1 = vmax.f32 %v1531_v61, 0.0  ;;  %v1627_v2 = vmax.f32 %v1563_v62, 0.0  ;;  %v1461_v3 = vmul.f32 %v2325_v17, %v1054_v63  ;;  %v1493_v4 = vmul.f32 %v2325_v17, %v1182_v0 }
 0x153   : > { %v1056_v5 = vpop.f32.mrf.mxu0  ;;  %v1184_v6 = vpop.f32.mrf.mxu1 }
 0x154   : > { %1659 = vst [vmem:[%s2341_s15 + $0x80] sm:$0xff] %v1595_v1  ;;  %1691 = vst [vmem:[%s2341_s15 + $0x180] sm:$0xff] %v1627_v2  ;;  %v1532_v7 = vadd.f32 %v2330_v19, %v1461_v3  ;;  %v1564_v8 = vadd.f32 %v2330_v19, %v1493_v4 }
 0x155   : > { %v1059_v9 = vpop.f32.mrf.mxu0  ;;  %v1187_v10 = vpop.f32.mrf.mxu1 }
 0x156   : > { %v1596_v11 = vmax.f32 %v1532_v7, 0.0  ;;  %v1628_v12 = vmax.f32 %v1564_v8, 0.0  ;;  %v1462_v13 = vmul.f32 %v2325_v17, %v1059_v9  ;;  %v1494_v14 = vmul.f32 %v2325_v17, %v1187_v10 }
 0x157   : > { %v1061_v15 = vpop.f32.mrf.mxu0  ;;  %v1189_v16 = vpop.f32.mrf.mxu1 }
 0x158   : > { %1660 = vst [vmem:[%s2341_s15 + $0x88] sm:$0xff] %v1596_v11  ;;  %1692 = vst [vmem:[%s2341_s15 + $0x188] sm:$0xff] %v1628_v12  ;;  %v1533_v18 = vadd.f32 %v2330_v19, %v1462_v13  ;;  %v1565_v20 = vadd.f32 %v2330_v19, %v1494_v14 }
 0x159   : > { %v1062_v21 = vpop.f32.mrf.mxu0  ;;  %v1190_v22 = vpop.f32.mrf.mxu1 }
 0x15a   : > { %v1597_v23 = vmax.f32 %v1533_v18, 0.0  ;;  %v1629_v24 = vmax.f32 %v1565_v20, 0.0  ;;  %v1463_v25 = vmul.f32 %v2325_v17, %v1062_v21  ;;  %v1495_v26 = vmul.f32 %v2325_v17, %v1190_v22 }
 0x15b   : > { %v1064_v27 = vpop.f32.mrf.mxu0  ;;  %v1192_v28 = vpop.f32.mrf.mxu1 }
 0x15c   : > { %1661 = vst [vmem:[%s2341_s15 + $0x90] sm:$0xff] %v1597_v23  ;;  %1693 = vst [vmem:[%s2341_s15 + $0x190] sm:$0xff] %v1629_v24  ;;  %v1534_v29 = vadd.f32 %v2330_v19, %v1463_v25  ;;  %v1566_v30 = vadd.f32 %v2330_v19, %v1495_v26 }
 0x15d   : > { %v1067_v31 = vpop.f32.mrf.mxu0  ;;  %v1195_v32 = vpop.f32.mrf.mxu1 }
 0x15e   : > { %v1598_v33 = vmax.f32 %v1534_v29, 0.0  ;;  %v1630_v34 = vmax.f32 %v1566_v30, 0.0  ;;  %v1464_v35 = vmul.f32 %v2325_v17, %v1067_v31  ;;  %v1496_v36 = vmul.f32 %v2325_v17, %v1195_v32 }
 0x15f   : > { %v1069_v37 = vpop.f32.mrf.mxu0  ;;  %v1197_v38 = vpop.f32.mrf.mxu1 }
 0x160   : > { %1662 = vst [vmem:[%s2341_s15 + $0x98] sm:$0xff] %v1598_v33  ;;  %1694 = vst [vmem:[%s2341_s15 + $0x198] sm:$0xff] %v1630_v34  ;;  %v1535_v39 = vadd.f32 %v2330_v19, %v1464_v35  ;;  %v1567_v40 = vadd.f32 %v2330_v19, %v1496_v36 }
 0x161   : > { %v1070_v41 = vpop.f32.mrf.mxu0  ;;  %v1198_v42 = vpop.f32.mrf.mxu1 }
 0x162   : > { %v1599_v43 = vmax.f32 %v1535_v39, 0.0  ;;  %v1631_v44 = vmax.f32 %v1567_v40, 0.0  ;;  %v1465_v45 = vmul.f32 %v2325_v17, %v1070_v41  ;;  %v1497_v46 = vmul.f32 %v2325_v17, %v1198_v42 }
 0x163   : > { %v1072_v47 = vpop.f32.mrf.mxu0  ;;  %v1200_v48 = vpop.f32.mrf.mxu1 }
 0x164   : > { %1663 = vst [vmem:[%s2341_s15 + $0xa0] sm:$0xff] %v1599_v43  ;;  %1695 = vst [vmem:[%s2341_s15 + $0x1a0] sm:$0xff] %v1631_v44  ;;  %v1536_v49 = vadd.f32 %v2330_v19, %v1465_v45  ;;  %v1568_v50 = vadd.f32 %v2330_v19, %v1497_v46 }
 0x165   : > { %v1075_v51 = vpop.f32.mrf.mxu0  ;;  %v1203_v52 = vpop.f32.mrf.mxu1 }
 0x166   : > { %v1600_v53 = vmax.f32 %v1536_v49, 0.0  ;;  %v1632_v54 = vmax.f32 %v1568_v50, 0.0  ;;  %v1466_v55 = vmul.f32 %v2325_v17, %v1075_v51  ;;  %v1498_v56 = vmul.f32 %v2325_v17, %v1203_v52 }
 0x167   : > { %v1077_v57 = vpop.f32.mrf.mxu0  ;;  %v1205_v58 = vpop.f32.mrf.mxu1 }
 0x168   : > { %1664 = vst [vmem:[%s2341_s15 + $0xa8] sm:$0xff] %v1600_v53  ;;  %1696 = vst [vmem:[%s2341_s15 + $0x1a8] sm:$0xff] %v1632_v54  ;;  %v1537_v59 = vadd.f32 %v2330_v19, %v1466_v55  ;;  %v1569_v60 = vadd.f32 %v2330_v19, %v1498_v56 }
 0x169   : > { %v1078_v61 = vpop.f32.mrf.mxu0  ;;  %v1206_v62 = vpop.f32.mrf.mxu1 }
 0x16a   : > { %v1601_v63 = vmax.f32 %v1537_v59, 0.0  ;;  %v1633_v0 = vmax.f32 %v1569_v60, 0.0  ;;  %v1467_v1 = vmul.f32 %v2325_v17, %v1078_v61  ;;  %v1499_v2 = vmul.f32 %v2325_v17, %v1206_v62 }
 0x16b   : > { %v1080_v3 = vpop.f32.mrf.mxu0  ;;  %v1208_v4 = vpop.f32.mrf.mxu1 }
 0x16c   : > { %1665 = vst [vmem:[%s2341_s15 + $0xb0] sm:$0xff] %v1601_v63  ;;  %1697 = vst [vmem:[%s2341_s15 + $0x1b0] sm:$0xff] %v1633_v0  ;;  %v1538_v5 = vadd.f32 %v2330_v19, %v1467_v1  ;;  %v1570_v6 = vadd.f32 %v2330_v19, %v1499_v2 }
 0x16d   : > { %v1083_v7 = vpop.f32.mrf.mxu0  ;;  %v1211_v8 = vpop.f32.mrf.mxu1 }
 0x16e   : > { %v1602_v9 = vmax.f32 %v1538_v5, 0.0  ;;  %v1634_v10 = vmax.f32 %v1570_v6, 0.0  ;;  %v1468_v11 = vmul.f32 %v2325_v17, %v1083_v7  ;;  %v1500_v12 = vmul.f32 %v2325_v17, %v1211_v8 }
 0x16f   : > { %v1085_v13 = vpop.f32.mrf.mxu0  ;;  %v1213_v14 = vpop.f32.mrf.mxu1 }
 0x170   : > { %1666 = vst [vmem:[%s2341_s15 + $0xb8] sm:$0xff] %v1602_v9  ;;  %1698 = vst [vmem:[%s2341_s15 + $0x1b8] sm:$0xff] %v1634_v10  ;;  %v1539_v15 = vadd.f32 %v2330_v19, %v1468_v11  ;;  %v1571_v16 = vadd.f32 %v2330_v19, %v1500_v12 }
 0x171   : > { %v1086_v18 = vpop.f32.mrf.mxu0  ;;  %v1214_v20 = vpop.f32.mrf.mxu1 }
 0x172   : > { %v1603_v21 = vmax.f32 %v1539_v15, 0.0  ;;  %v1635_v22 = vmax.f32 %v1571_v16, 0.0  ;;  %v1469_v23 = vmul.f32 %v2325_v17, %v1086_v18  ;;  %v1501_v24 = vmul.f32 %v2325_v17, %v1214_v20 }
 0x173   : > { %v1088_v25 = vpop.f32.mrf.mxu0  ;;  %v1216_v26 = vpop.f32.mrf.mxu1 }
 0x174   : > { %1667 = vst [vmem:[%s2341_s15 + $0xc0] sm:$0xff] %v1603_v21  ;;  %1699 = vst [vmem:[%s2341_s15 + $0x1c0] sm:$0xff] %v1635_v22  ;;  %v1540_v27 = vadd.f32 %v2330_v19, %v1469_v23  ;;  %v1572_v28 = vadd.f32 %v2330_v19, %v1501_v24 }
 0x175   : > { %v1091_v29 = vpop.f32.mrf.mxu0  ;;  %v1219_v30 = vpop.f32.mrf.mxu1 }
 0x176   : > { %v1604_v31 = vmax.f32 %v1540_v27, 0.0  ;;  %v1636_v32 = vmax.f32 %v1572_v28, 0.0  ;;  %v1470_v33 = vmul.f32 %v2325_v17, %v1091_v29  ;;  %v1502_v34 = vmul.f32 %v2325_v17, %v1219_v30 }
 0x177   : > { %v1093_v35 = vpop.f32.mrf.mxu0  ;;  %v1221_v36 = vpop.f32.mrf.mxu1 }
 0x178   : > { %1668 = vst [vmem:[%s2341_s15 + $0xc8] sm:$0xff] %v1604_v31  ;;  %1700 = vst [vmem:[%s2341_s15 + $0x1c8] sm:$0xff] %v1636_v32  ;;  %v1541_v37 = vadd.f32 %v2330_v19, %v1470_v33  ;;  %v1573_v38 = vadd.f32 %v2330_v19, %v1502_v34 }
 0x179   : > { %v1094_v39 = vpop.f32.mrf.mxu0  ;;  %v1222_v40 = vpop.f32.mrf.mxu1 }
 0x17a   : > { %v1605_v41 = vmax.f32 %v1541_v37, 0.0  ;;  %v1637_v42 = vmax.f32 %v1573_v38, 0.0  ;;  %v1471_v43 = vmul.f32 %v2325_v17, %v1094_v39  ;;  %v1503_v44 = vmul.f32 %v2325_v17, %v1222_v40 }
 0x17b   : > { %v1096_v45 = vpop.f32.mrf.mxu0  ;;  %v1224_v46 = vpop.f32.mrf.mxu1 }
 0x17c   : > { %1669 = vst [vmem:[%s2341_s15 + $0xd0] sm:$0xff] %v1605_v41  ;;  %1701 = vst [vmem:[%s2341_s15 + $0x1d0] sm:$0xff] %v1637_v42  ;;  %v1542_v47 = vadd.f32 %v2330_v19, %v1471_v43  ;;  %v1574_v48 = vadd.f32 %v2330_v19, %v1503_v44 }
 0x17d   : > { %v1099_v49 = vpop.f32.mrf.mxu0  ;;  %v1227_v50 = vpop.f32.mrf.mxu1 }
 0x17e   : > { %v1606_v51 = vmax.f32 %v1542_v47, 0.0  ;;  %v1638_v52 = vmax.f32 %v1574_v48, 0.0  ;;  %v1472_v53 = vmul.f32 %v2325_v17, %v1099_v49  ;;  %v1504_v54 = vmul.f32 %v2325_v17, %v1227_v50 }
 0x17f   : > { %v1101_v55 = vpop.f32.mrf.mxu0  ;;  %v1229_v56 = vpop.f32.mrf.mxu1 }
 0x180   : > { %1670 = vst [vmem:[%s2341_s15 + $0xd8] sm:$0xff] %v1606_v51  ;;  %1702 = vst [vmem:[%s2341_s15 + $0x1d8] sm:$0xff] %v1638_v52  ;;  %v1543_v57 = vadd.f32 %v2330_v19, %v1472_v53  ;;  %v1575_v58 = vadd.f32 %v2330_v19, %v1504_v54 }
 0x181   : > { %v1102_v59 = vpop.f32.mrf.mxu0  ;;  %v1230_v60 = vpop.f32.mrf.mxu1 }
 0x182   : > { %v1607_v61 = vmax.f32 %v1543_v57, 0.0  ;;  %v1639_v62 = vmax.f32 %v1575_v58, 0.0  ;;  %v1473_v63 = vmul.f32 %v2325_v17, %v1102_v59  ;;  %v1505_v0 = vmul.f32 %v2325_v17, %v1230_v60 }
 0x183   : > { %v1104_v1 = vpop.f32.mrf.mxu0  ;;  %v1232_v2 = vpop.f32.mrf.mxu1 }
 0x184   : > { %1671 = vst [vmem:[%s2341_s15 + $0xe0] sm:$0xff] %v1607_v61  ;;  %1703 = vst [vmem:[%s2341_s15 + $0x1e0] sm:$0xff] %v1639_v62  ;;  %v1544_v3 = vadd.f32 %v2330_v19, %v1473_v63  ;;  %v1576_v4 = vadd.f32 %v2330_v19, %v1505_v0 }
 0x185   : > { %v1107_v5 = vpop.f32.mrf.mxu0  ;;  %v1235_v6 = vpop.f32.mrf.mxu1 }
 0x186   : > { %v1608_v7 = vmax.f32 %v1544_v3, 0.0  ;;  %v1640_v8 = vmax.f32 %v1576_v4, 0.0  ;;  %v1474_v9 = vmul.f32 %v2325_v17, %v1107_v5  ;;  %v1506_v10 = vmul.f32 %v2325_v17, %v1235_v6 }
 0x187   : > { %v1109_v11 = vpop.f32.mrf.mxu0  ;;  %v1237_v12 = vpop.f32.mrf.mxu1 }
 0x188   : > { %1672 = vst [vmem:[%s2341_s15 + $0xe8] sm:$0xff] %v1608_v7  ;;  %1704 = vst [vmem:[%s2341_s15 + $0x1e8] sm:$0xff] %v1640_v8  ;;  %v1545_v13 = vadd.f32 %v2330_v19, %v1474_v9  ;;  %v1577_v14 = vadd.f32 %v2330_v19, %v1506_v10 }
 0x189   : > { %v1110_v15 = vpop.f32.mrf.mxu0  ;;  %v1238_v16 = vpop.f32.mrf.mxu1 }
 0x18a   : > { %v1609_v18 = vmax.f32 %v1545_v13, 0.0  ;;  %v1641_v20 = vmax.f32 %v1577_v14, 0.0  ;;  %v1475_v21 = vmul.f32 %v2325_v17, %v1110_v15  ;;  %v1507_v22 = vmul.f32 %v2325_v17, %v1238_v16 }
 0x18b   : > { %v1112_v23 = vpop.f32.mrf.mxu0  ;;  %v1240_v24 = vpop.f32.mrf.mxu1 }
 0x18c   : > { %1673 = vst [vmem:[%s2341_s15 + $0xf0] sm:$0xff] %v1609_v18  ;;  %1705 = vst [vmem:[%s2341_s15 + $0x1f0] sm:$0xff] %v1641_v20  ;;  %v1546_v25 = vadd.f32 %v2330_v19, %v1475_v21  ;;  %v1578_v26 = vadd.f32 %v2330_v19, %v1507_v22 }
 0x18e   : > { %v1610_v27 = vmax.f32 %v1546_v25, 0.0  ;;  %v1642_v28 = vmax.f32 %v1578_v26, 0.0 }
 0x190   : > { %1674 = vst [vmem:[%s2341_s15 + $0xf8] sm:$0xff] %v1610_v27  ;;  %1706 = vst [vmem:[%s2341_s15 + $0x1f8] sm:$0xff] %v1642_v28 }
 0x191 PF: > { %s14_s17 = sadd.s32 1, %s2122_s17   ;;  %s2545_s15 = smov %s2118_s16 }
 0x192   : > { %p11_p5 = scmp.ge.s32.totalorder %s14_s17, 6   ;;  %s2546_s16 = smov %s2548_s18 }
 0x194   :  { %13 = sbr.rel (!%p11_p5) target bundleno = 2 (0x2), region = 83 }

</bundles_post_ra>
